<compile_context>
chip_gen: v7x
topology: tpu7x:2x2x1
jax: 0.10.0
libtpu: 0.0.40
codegen_flags: <defaults>
</compile_context>

<pallas_src>
import functools
import math

import jax
import jax.numpy as jnp
from jax.experimental import pallas as pl
from jax.experimental.pallas import tpu as pltpu


def _round_up(x, m):
    return ((x + m - 1) // m) * m


def _streamable(x):
    """Keep 16-/32-bit floats in their native dtype (kernel upcasts per chunk)."""
    if x.dtype in (jnp.float32, jnp.bfloat16, jnp.float16):
        return x
    return x.astype(jnp.float32)


def _corrected_t_loss_kernel(pv_ref, te_ref, out_ref, acc_ref, *,
                             nu, n_total, num_tiles, lanes,
                             chunk_sizes, rem, has_partial):
    i = pl.program_id(0)

    @pl.when(i == 0)
    def _init():
        acc_ref[...] = jnp.zeros_like(acc_ref)

    half_nu_p1 = jnp.float32(0.5 * (nu + 1.0))
    half_nu = jnp.float32(0.5 * nu)
    nu_m2 = jnp.float32(nu - 2.0)

    def accumulate(apply_mask):
        row0 = 0
        for cr in chunk_sizes:                       # static Python loop
            pv = pv_ref[pl.ds(row0, cr), :].astype(jnp.float32)
            te = te_ref[pl.ds(row0, cr), :].astype(jnp.float32)
            # 0.5*log(pv) + 0.5*(nu+1)*log(1 + te/((nu-2)*pv))
            #   = 0.5*(nu+1)*log((nu-2)*pv + te) - 0.5*nu*log(pv)
            #     - 0.5*(nu+1)*log(nu-2)          (constant added at finalize)
            loss = half_nu_p1 * jnp.log(nu_m2 * pv + te) - half_nu * jnp.log(pv)
            if apply_mask:
                # Only ever traced for the single final (partial) tile.
                r = jax.lax.broadcasted_iota(jnp.int32, (cr, lanes), 0)
                c = jax.lax.broadcasted_iota(jnp.int32, (cr, lanes), 1)
                lidx = (row0 + r) * lanes + c        # local index, < ~1M: int32-safe
                loss = jnp.where(lidx < rem, loss, 0.0)
            # (cr, lanes) -> (8, lanes): sublane-blocked pure-VPU vreg adds;
            # the expensive cross-lane reduce is deferred to the finalize step.
            acc_ref[...] += loss.reshape(cr // 8, 8, lanes).sum(axis=0)
            row0 += cr

    if has_partial:
        if num_tiles > 1:
            @pl.when(i != num_tiles - 1)
            def _full_tiles():
                accumulate(False)

        @pl.when(i == num_tiles - 1)
        def _tail_tile():
            accumulate(True)
    else:
        accumulate(False)

    @pl.when(i == num_tiles - 1)
    def _finalize():
        const = jnp.float32(-0.5 * (nu + 1.0) * math.log(nu - 2.0))
        out_ref[0, 0] = jnp.sum(acc_ref[...]) / jnp.float32(n_total) + const


def corrected_t_loss(pred_var, target_eps_squared, nu, *,
                     lanes=512, max_tile_rows=2048):
    """Pallas implementation of CorrectedTLoss.forward (returns scalar mean)."""
    assert pred_var.shape == target_eps_squared.shape
    nu = float(nu)
    if nu <= 2.0:
        raise ValueError("CorrectedTLoss requires nu > 2")
    if lanes % 128 != 0 or lanes < 128:
        raise ValueError("lanes must be a positive multiple of 128")
    n_total = int(pred_var.size)
    if n_total == 0:
        raise ValueError("inputs must be non-empty")

    pv = _streamable(jnp.ravel(pred_var))
    te = _streamable(jnp.ravel(target_eps_squared))

    # Sublane multiple for the narrowest streamed dtype: 8 (f32), 16 (bf16/f16).
    itemsize = min(pv.dtype.itemsize, te.dtype.itemsize)
    row_mult = 8 * (4 // itemsize)

    # Pad only to a multiple of (row_mult * lanes) elements; padded elements
    # (pv=1, te=0) stay finite and are masked in the final tile.
    padded_len = _round_up(n_total, row_mult * lanes)
    if padded_len != n_total:
        pv = jnp.pad(pv, (0, padded_len - n_total), constant_values=1.0)
        te = jnp.pad(te, (0, padded_len - n_total), constant_values=0.0)
    rows = padded_len // lanes
    pv2 = pv.reshape(rows, lanes)
    te2 = te.reshape(rows, lanes)

    tile_rows = min(rows, _round_up(max_tile_rows, row_mult))
    num_tiles = -(-rows // tile_rows)                 # cdiv; last tile may be partial
    tile_elems = tile_rows * lanes
    rem = n_total - (num_tiles - 1) * tile_elems      # valid elems in final tile
    has_partial = rem < tile_elems

    # Split each tile into row chunks (<=512 rows, each a multiple of 8) so no
    # full-tile f32 temporary is materialized in VMEM.
    chunk_sizes, left = [], tile_rows
    while left > 0:
        c = min(512, left)
        chunk_sizes.append(c)
        left -= c
    chunk_sizes = tuple(chunk_sizes)

    kernel = functools.partial(
        _corrected_t_loss_kernel,
        nu=nu, n_total=n_total, num_tiles=num_tiles, lanes=lanes,
        chunk_sizes=chunk_sizes, rem=rem, has_partial=has_partial)

    out = pl.pallas_call(
        kernel,
        out_shape=jax.ShapeDtypeStruct((1, 1), jnp.float32),
        grid=(num_tiles,),
        in_specs=[
            pl.BlockSpec((tile_rows, lanes), lambda i: (i, 0)),
            pl.BlockSpec((tile_rows, lanes), lambda i: (i, 0)),
        ],
        out_specs=pl.BlockSpec((1, 1), lambda i: (0, 0),
                               memory_space=pltpu.SMEM),
        scratch_shapes=[pltpu.VMEM((8, lanes), jnp.float32)],
        compiler_params=pltpu.CompilerParams(
            dimension_semantics=("arbitrary",),
            vmem_limit_bytes=48 * 1024 * 1024,
            allow_input_fusion=[True, True]),
    )(pv2, te2)
    return out[0, 0]


def _reference(pred_var, target_eps_squared, nu):
    pv = pred_var.astype(jnp.float32)
    te = target_eps_squared.astype(jnp.float32)
    term = 1.0 + te / ((nu - 2.0) * pv)
    loss = 0.5 * jnp.log(pv) + 0.5 * (nu + 1.0) * jnp.log(term)
    return jnp.mean(loss)


if __name__ == "__main__":
    nu = 5.0  # degrees of freedom (module __init__ arg); must be > 2
    key = jax.random.PRNGKey(0)
    k1, k2, k3, k4, k5, k6 = jax.random.split(key, 6)

    # Test 1: small (batch, seq) per-timestep values, default tiling
    # (single tile, masked tail over the in-bounds pad).
    pred_var = jax.nn.softplus(
        jax.random.normal(k1, (2, 8), jnp.float32)) + 1e-3
    target_eps_squared = jnp.square(jax.random.normal(k2, (2, 8), jnp.float32))
    loss = jax.block_until_ready(
        corrected_t_loss(pred_var, target_eps_squared, nu))
    ref = _reference(pred_var, target_eps_squared, nu)
    assert jnp.allclose(loss, ref, rtol=1e-5, atol=2e-5), (loss, ref)

    # Test 2: non-(8,128)-aligned shape with tiny tiles -> multi-step grid,
    # accumulator init/carry/finalize path and masked final tile.
    pv_b = jax.nn.softplus(
        jax.random.normal(k3, (3, 50, 7), jnp.float32)) + 1e-3
    te_b = jnp.square(jax.random.normal(k4, (3, 50, 7), jnp.float32))
    loss_b = jax.block_until_ready(
        corrected_t_loss(pv_b, te_b, nu, lanes=128, max_tile_rows=8))
    ref_b = _reference(pv_b, te_b, nu)
    assert jnp.allclose(loss_b, ref_b, rtol=1e-5, atol=2e-5), (loss_b, ref_b)

    # Test 3: larger flat size at lanes=128 -> exercises the in-tile
    # row-chunking path (tile_rows > 512) with no padding/masking at all.
    pv_c = jax.nn.softplus(
        jax.random.normal(k5, (2, 300, 128), jnp.float32)) + 1e-3
    te_c = jnp.square(jax.random.normal(k6, (2, 300, 128), jnp.float32))
    loss_c = jax.block_until_ready(corrected_t_loss(pv_c, te_c, nu, lanes=128))
    ref_c = _reference(pv_c, te_c, nu)
    assert jnp.allclose(loss_c, ref_c, rtol=1e-5, atol=2e-5), (loss_c, ref_c)

    print("KERNEL_OK")
</pallas_src>

<mosaic_0001>
module attributes {stable_mosaic.version = 11 : i64} {
  func.func @_corrected_t_loss_kernel(%arg0: i32, %arg1: memref<8x512xf32, #tpu.memory_space<vmem>>, %arg2: memref<8x512xf32, #tpu.memory_space<vmem>>, %arg3: memref<1x1xf32, #tpu.memory_space<smem>>, %arg4: memref<8x512xf32, #tpu.memory_space<vmem>>) attributes {dimension_semantics = [#tpu.dimension_semantics<arbitrary>], iteration_bounds = array<i64: 1>, scalar_prefetch = 0 : i64, scratch_operands = 1 : i64, tpu.core_type = #tpu.core_type<tc>, window_params = [{transform_indices = @transform_0, window_bounds = array<i64: 8, 512>}, {transform_indices = @transform_1, window_bounds = array<i64: 8, 512>}, {transform_indices = @transform_2, window_bounds = array<i64: 1, 1>}]} {
    %c0_i32 = arith.constant 0 : i32
    %0 = arith.cmpi eq, %arg0, %c0_i32 : i32
    %1 = arith.extui %0 : i1 to i32
    %c0_i32_0 = arith.constant 0 : i32
    %2 = arith.cmpi ne, %1, %c0_i32_0 : i32
    scf.if %2 {
      %cst_7 = arith.constant 0.000000e+00 : f32
      %9 = vector.broadcast %cst_7 : f32 to vector<8x512xf32>
      %c0 = arith.constant 0 : index
      %c0_8 = arith.constant 0 : index
      %10 = vector.load %arg4[%c0, %c0_8] : memref<8x512xf32, #tpu.memory_space<vmem>>, vector<8x512xf32>
      tpu.vector_store %arg4[%c0, %c0_8], %9 {strides = array<i32>} : memref<8x512xf32, #tpu.memory_space<vmem>>, vector<8x512xf32>,
    } else {
    }
    %c0_i32_1 = arith.constant 0 : i32
    %3 = arith.cmpi eq, %arg0, %c0_i32_1 : i32
    %4 = arith.extui %3 : i1 to i32
    %cst = arith.constant 3.000000e+00 : f32
    %cst_2 = arith.constant 3.000000e+00 : f32
    %cst_3 = arith.constant 2.500000e+00 : f32
    %c0_i32_4 = arith.constant 0 : i32
    %5 = arith.cmpi ne, %4, %c0_i32_4 : i32
    scf.if %5 {
      %c0 = arith.constant 0 : index
      %c0_7 = arith.constant 0 : index
      %9 = vector.load %arg1[%c0, %c0_7] : memref<8x512xf32, #tpu.memory_space<vmem>>, vector<8x512xf32>
      %c0_8 = arith.constant 0 : index
      %c0_9 = arith.constant 0 : index
      %10 = vector.load %arg2[%c0_8, %c0_9] : memref<8x512xf32, #tpu.memory_space<vmem>>, vector<8x512xf32>
      %11 = vector.broadcast %cst : f32 to vector<8x512xf32>
      %12 = arith.mulf %11, %9 : vector<8x512xf32>
      %13 = arith.addf %12, %10 : vector<8x512xf32>
      %14 = math.log %13 : vector<8x512xf32>
      %15 = vector.broadcast %cst_2 : f32 to vector<8x512xf32>
      %16 = arith.mulf %15, %14 : vector<8x512xf32>
      %17 = math.log %9 : vector<8x512xf32>
      %18 = vector.broadcast %cst_3 : f32 to vector<8x512xf32>
      %19 = arith.mulf %18, %17 : vector<8x512xf32>
      %20 = arith.subf %16, %19 : vector<8x512xf32>
      %21 = tpu.iota {dimensions = array<i32: 0>} : vector<8x512xi32>
      %22 = tpu.iota {dimensions = array<i32: 1>} : vector<8x512xi32>
      %c0_i32_10 = arith.constant 0 : i32
      %23 = vector.broadcast %c0_i32_10 : i32 to vector<8x512xi32>
      %24 = arith.addi %23, %21 : vector<8x512xi32>
      %c512_i32 = arith.constant 512 : i32
      %25 = vector.broadcast %c512_i32 : i32 to vector<8x512xi32>
      %26 = arith.muli %24, %25 : vector<8x512xi32>
      %27 = arith.addi %26, %22 : vector<8x512xi32>
      %c16_i32 = arith.constant 16 : i32
      %28 = vector.broadcast %c16_i32 : i32 to vector<8x512xi32>
      %29 = arith.cmpi slt, %27, %28 : vector<8x512xi32>
      %cst_11 = arith.constant 0.000000e+00 : f32
      %30 = vector.broadcast %cst_11 : f32 to vector<8x512xf32>
      %31 = arith.select %29, %20, %30 : vector<8x512xi1>, vector<8x512xf32>
      %c0_12 = arith.constant 0 : index
      %c0_13 = arith.constant 0 : index
      %32 = vector.load %arg4[%c0_12, %c0_13] : memref<8x512xf32, #tpu.memory_space<vmem>>, vector<8x512xf32>
      %33 = vector.shape_cast %31 : vector<8x512xf32> to vector<1x8x512xf32>
      %cst_14 = arith.constant dense<0.000000e+00> : vector<8x512xf32>
      %34 = vector.multi_reduction <add>, %33, %cst_14 [0] : vector<1x8x512xf32> to vector<8x512xf32>
      %35 = arith.addf %32, %34 : vector<8x512xf32>
      %c0_15 = arith.constant 0 : index
      %c0_16 = arith.constant 0 : index
      %36 = vector.load %arg4[%c0_15, %c0_16] : memref<8x512xf32, #tpu.memory_space<vmem>>, vector<8x512xf32>
      tpu.vector_store %arg4[%c0_15, %c0_16], %35 {strides = array<i32>} : memref<8x512xf32, #tpu.memory_space<vmem>>, vector<8x512xf32>,
    } else {
    }
    %c0_i32_5 = arith.constant 0 : i32
    %6 = arith.cmpi eq, %arg0, %c0_i32_5 : i32
    %7 = arith.extui %6 : i1 to i32
    %c0_i32_6 = arith.constant 0 : i32
    %8 = arith.cmpi ne, %7, %c0_i32_6 : i32
    scf.if %8 {
      %c0 = arith.constant 0 : index
      %c0_7 = arith.constant 0 : index
      %9 = vector.load %arg4[%c0, %c0_7] : memref<8x512xf32, #tpu.memory_space<vmem>>, vector<8x512xf32>
      %10 = vector.shape_cast %9 : vector<8x512xf32> to vector<1x8x512xf32>
      %cst_8 = arith.constant dense<0.000000e+00> : vector<1xf32>
      %11 = vector.multi_reduction <add>, %10, %cst_8 [1, 2] : vector<1x8x512xf32> to vector<1xf32>
      %12 = vector.shape_cast %11 : vector<1xf32> to vector<1x1x1xf32>
      %13 = vector.extract %12[0, 0, 0] : f32 from vector<1x1x1xf32>
      %cst_9 = arith.constant 1.600000e+01 : f32
      %14 = arith.divf %13, %cst_9 : f32
      %cst_10 = arith.constant -3.29583693 : f32
      %15 = arith.addf %14, %cst_10 : f32
      %c0_11 = arith.constant 0 : index
      %c0_12 = arith.constant 0 : index
      %16 = memref.load %arg3[%c0_11, %c0_12] : memref<1x1xf32, #tpu.memory_space<smem>>
      memref.store %15, %arg3[%c0_11, %c0_12] : memref<1x1xf32, #tpu.memory_space<smem>>
    } else {
    }
    return
  }
  func.func @transform_0(%arg0: i32) -> (i32, i32) {
    %c0_i32 = arith.constant 0 : i32
    %c0_i32_0 = arith.constant 0 : i32
    return %arg0, %c0_i32 : i32, i32
  }
  func.func @transform_1(%arg0: i32) -> (i32, i32) {
    %c0_i32 = arith.constant 0 : i32
    %c0_i32_0 = arith.constant 0 : i32
    return %arg0, %c0_i32 : i32, i32
  }
  func.func @transform_2(%arg0: i32) -> (i32, i32) {
    %c0_i32 = arith.constant 0 : i32
    %c0_i32_0 = arith.constant 0 : i32
    %c0_i32_1 = arith.constant 0 : i32
    return %c0_i32, %c0_i32_0 : i32, i32
  }
}

</mosaic_0001>

<bundles_post_ra>
// kernel: tpu_custom_call.1
= control target key start
LH: loop header
LB: loop body
LE: loop exit
PB: predicated region body
PF: predicated region fallthrough
CT: control target
= control target key end

     0   :  { %7 = vsyncpa [#allocation4], 0  ;;  %s296_s0 = inlined_call_operand.hbm [shape: f32[8,512], index: 0, kind: input, shape index: {}]   ;;  %s297_s1 = inlined_call_operand.hbm [shape: f32[8,512], index: 1, kind: input, shape index: {}]   ;;  %s298_s2 = inlined_call_operand.hbm [shape: f32[1,1], index: 2, kind: output, shape index: {}]  }
   0x1   :  { %8 = vsyncpa [#allocation7], 0 }
   0x2   :  { %9 = vsyncpa [#allocation5], 0  ;;  %s242_s9 = smov [#allocation3]   ;;  %s243_s11 = smov [#allocation6]  }
   0x3   :  { %s16_s10 = sshll.u32 %s242_s9, 4  ;;  %s26_s12 = sshll.u32 %s243_s11, 4  ;;  %s17_s10 = int_to_ptr.vmem [resolvable:$true] %s16_s10  ;;  %s27_s12 = int_to_ptr.vmem [resolvable:$true] %s26_s12 }
   0x4   :  { %s182_s15 = scalar_lea.hbm %s296_s0, 512 }
   0x5   :  { %p183_p0 = scmp.ne.s32.totalorder %s296_s0, %s182_s15  ;;  %p186_p1 = scmp.lt.u32.totalorder %s182_s15, %s296_s0 }
   0x7   :  { %p188_p2 = pnand %p186_p1, %p183_p0 }
   0x9   :  { %191 = shalt.err (!%p188_p2)
}
   0xa   :  { %s192_s20 = scalar_lea.vmem %s17_s10, 512  ;;  %p197_p4 = scmp.lt.s32.totalorder %s17_s10, %s17_s10 }
   0xb   :  { %p193_p3 = scmp.ne.s32.totalorder %s17_s10, %s192_s20  ;;  %p198_p5 = scmp.lt.s32.totalorder %s192_s20, %s192_s20 }
   0xd   :  { %p199_p6 = por %p198_p5, %p197_p4 }
   0xf   :  { %p200_p7 = pnand %p199_p6, %p193_p3 }
  0x11   :  { %203 = shalt.err (!%p200_p7)
}
  0x12   :  { %19 = dma.hbm_to_vmem [thread:$0]  %s296_s0, 512, %s17_s10, [#allocation4]  }
  0x13   :  { %s204_s25 = scalar_lea.hbm %s297_s1, 512 }
  0x14   :  { %p205_p8 = scmp.ne.s32.totalorder %s297_s1, %s204_s25  ;;  %p208_p9 = scmp.lt.u32.totalorder %s204_s25, %s297_s1 }
  0x16   :  { %p210_p10 = pnand %p208_p9, %p205_p8 }
  0x18   :  { %213 = shalt.err (!%p210_p10)
}
  0x19   :  { %s214_s30 = scalar_lea.vmem %s27_s12, 512  ;;  %p219_p12 = scmp.lt.s32.totalorder %s27_s12, %s27_s12 }
  0x1a   :  { %p215_p11 = scmp.ne.s32.totalorder %s27_s12, %s214_s30  ;;  %p220_p13 = scmp.lt.s32.totalorder %s214_s30, %s214_s30 }
  0x1c   :  { %p221_p0 = por %p220_p13, %p219_p12 }
  0x1e   :  { %p222_p1 = pnand %p221_p0, %p215_p11 }
  0x20   :  { %225 = shalt.err (!%p222_p1)
}
  0x21   :  { %29 = dma.hbm_to_vmem [thread:$0]  %s297_s1, 512, %s27_s12, [#allocation7]  }
  0x22   :  { %236 = dma.done.wait [#allocation4], 512  }
  0x23   :  { %237 = vsyncadd [#allocation4], 4294966784 }
  0x24   :  { %238 = dma.done.wait [#allocation7], 512  }
  0x25   :  { %239 = vsyncadd [#allocation7], 4294966784  ;;  %v44_v0 = vld [vmem:[#allocation3] sm:$0xff]  ;;  %v45_v1 = vld [vmem:[#allocation3 + $0x8] sm:$0xff]  ;;  %v88_v12 = vlaneseq  ;;  %s226_s8 = scalar_lea.hbm %s298_s2, 16 }
  0x26   :  { %v46_v2 = vld [vmem:[#allocation3 + $0x10] sm:$0xff]  ;;  %v47_v3 = vld [vmem:[#allocation3 + $0x18] sm:$0xff]  ;;  %v48_v4 = vld [vmem:[#allocation6] sm:$0xff]  ;;  %v52_v6 = vmul.f32 3.0, %v44_v0  ;;  %v53_v7 = vmul.f32 3.0, %v45_v1  ;;  %166 = vlog2.f32 %v44_v0  ;;  %p227_p2 = scmp.ne.s32.totalorder %s298_s2, %s226_s8  ;;  %p230_p3 = scmp.lt.u32.totalorder %s226_s8, %s298_s2 }
  0x27   :  { %v49_v5 = vld [vmem:[#allocation6 + $0x8] sm:$0xff]  ;;  %v54_v8 = vmul.f32 3.0, %v46_v2  ;;  %v50_v9 = vld [vmem:[#allocation6 + $0x10] sm:$0xff]  ;;  %v51_v10 = vld [vmem:[#allocation6 + $0x18] sm:$0xff]  ;;  %v55_v11 = vmul.f32 3.0, %v47_v3  ;;  %168 = vlog2.f32 %v45_v1  ;;  %v89_v17 = vshrl.u32 %v88_v12, 7 }
  0x28   :  { %v56_v13 = vadd.f32 %v52_v6, %v48_v4  ;;  %v57_v14 = vadd.f32 %v53_v7, %v49_v5  ;;  %170 = vlog2.f32 %v46_v2  ;;  %v91_v18 = vand.u32 127, %v88_v12  ;;  %p232_p4 = pnand %p230_p3, %p227_p2 }
  0x29   :  { %v58_v15 = vadd.f32 %v54_v8, %v50_v9  ;;  %v59_v16 = vadd.f32 %v55_v11, %v51_v10  ;;  %172 = vlog2.f32 %v47_v3  ;;  %v95_v20 = vmul.u32 512, %v89_v17 }
  0x2a   :  { %174 = vlog2.f32 %v56_v13  ;;  %v92_v23 = vadd.s32 128, %v91_v18  ;;  %v93_v26 = vadd.s32 256, %v91_v18  ;;  %v94_v29 = vadd.s32 384, %v91_v18 }
  0x2b   :  { %176 = vlog2.f32 %v57_v14  ;;  %v96_v32 = vadd.s32 %v95_v20, %v91_v18 }
  0x2c   :  { %178 = vlog2.f32 %v58_v15  ;;  %v97_v36 = vadd.s32 %v95_v20, %v92_v23  ;;  %v98_v40 = vadd.s32 %v95_v20, %v93_v26  ;;  %v99_v45 = vadd.s32 %v95_v20, %v94_v29 }
  0x2d   :  { %180 = vlog2.f32 %v59_v16  ;;  %vm100_vm0 = vcmp.lt.s32.totalorder %v96_v32, 16 }
  0x2e   :  { %vm101_vm1 = vcmp.lt.s32.totalorder %v97_v36, 16  ;;  %vm102_vm2 = vcmp.lt.s32.totalorder %v98_v40, 16  ;;  %vm103_vm3 = vcmp.lt.s32.totalorder %v99_v45, 16 }
  0x30   :  { %v167_v19 = vpop.eup %166 }
  0x31   :  { %v169_v21 = vpop.eup %168  ;;  %v73_v22 = vmul.f32 0.6931472, %v167_v19 }
  0x32   :  { %v171_v24 = vpop.eup %170  ;;  %v75_v25 = vmul.f32 0.6931472, %v169_v21 }
  0x33   :  { %v173_v27 = vpop.eup %172  ;;  %v77_v28 = vmul.f32 0.6931472, %v171_v24  ;;  %v80_v35 = vmul.f32 2.5, %v73_v22 }
  0x34   :  { %v175_v30 = vpop.eup %174  ;;  %v79_v31 = vmul.f32 0.6931472, %v173_v27  ;;  %v81_v39 = vmul.f32 2.5, %v75_v25 }
  0x35   :  { %v177_v33 = vpop.eup %176  ;;  %v61_v34 = vmul.f32 0.6931472, %v175_v30  ;;  %v82_v44 = vmul.f32 2.5, %v77_v28 }
  0x36   :  { %v179_v37 = vpop.eup %178  ;;  %v63_v38 = vmul.f32 0.6931472, %v177_v33  ;;  %v83_v48 = vmul.f32 2.5, %v79_v31 }
  0x37   :  { %v181_v41 = vpop.eup %180  ;;  %v65_v42 = vmul.f32 0.6931472, %v179_v37  ;;  %v68_v43 = vmul.f32 3.0, %v61_v34 }
  0x38   :  { %v67_v46 = vmul.f32 0.6931472, %v181_v41  ;;  %v69_v47 = vmul.f32 3.0, %v63_v38 }
  0x39   :  { %v70_v49 = vmul.f32 3.0, %v65_v42  ;;  %v84_v50 = vsub.f32 %v68_v43, %v80_v35 }
  0x3a   :  { %v71_v51 = vmul.f32 3.0, %v67_v46  ;;  %v85_v52 = vsub.f32 %v69_v47, %v81_v39 }
  0x3b   :  { %v86_v53 = vsub.f32 %v70_v49, %v82_v44  ;;  %v104_v54 = vsel %vm100_vm0, %v84_v50, 0.0 }
  0x3c   :  { %v87_v55 = vsub.f32 %v71_v51, %v83_v48  ;;  %v105_v56 = vsel %vm101_vm1, %v85_v52, 0.0 }
  0x3d   :  { %v106_v57 = vsel %vm102_vm2, %v86_v53, 0.0  ;;  %v128_v58 = vadd.f32 %v105_v56, %v104_v54 }
  0x3e   :  { %v107_v59 = vsel %vm103_vm3, %v87_v55, 0.0 }
  0x3f   :  { %v129_v60 = vadd.f32 %v128_v58, %v106_v57 }
  0x41   :  { %v130_v61 = vadd.f32 %v129_v60, %v107_v59 }
  0x43   :  { %131 = vadd.xlane.f32.xlu0 %v130_v61 }
  0xd0   :  { %v132_v62 = vpop.xlane.xlu0 %131 }
  0xd1   :  { %v133_v63 = vrot.slane %v132_v62, 4 }
  0xd3   :  { %v134_v0 = vadd.f32 %v133_v63, %v132_v62 }
  0xd5   :  { %v135_v1 = vrot.slane %v134_v0, 2 }
  0xd7   :  { %v136_v2 = vadd.f32 %v135_v1, %v134_v0 }
  0xd9   :  { %v137_v3 = vrot.slane %v136_v2, 1 }
  0xdb   :  { %v138_v4 = vadd.f32 %v137_v3, %v136_v2 }
  0xdd   :  { %161 = vpush %v138_v4 }
 0x10e   :  { %s162_s1 = spop %161 }
 0x10f   :  { %s142_s4 = smul.f32 0.0625, %s162_s1 }
 0x111   :  { %s143_s5 = sadd.f32 -3.295837, %s142_s4 }
 0x113   :  { %145 = sst [smem:[#allocation8]] %s143_s5 }
 0x114   :  { %235 = shalt.err (!%p232_p4)
}
 0x115   :  { %s244_s13 = smov [#allocation8]  }
 0x116   :  { %153 = dma.smem_to_hbm %s244_s13, 16, %s298_s2, [#allocation5]  }
 0x117   :  { %240 = dma.done.wait [#allocation5], 16  }
 0x118   :  { %241 = vsyncadd [#allocation5], 4294967280 }
 0x119   :  { %157 = sfence }
 0x11a   :  { %158 = vsyncpa [#allocation4], 1 }
 0x11b   :  { %159 = vsyncpa [#allocation7], 1 }
 0x11c   :  { %160 = vsyncpa [#allocation5], 1 }

</bundles_post_ra>
